<compile_context>
chip_gen: v6e
topology: v6e:2x2x1
jax: 0.10.0
libtpu: 0.0.40
codegen_flags: <defaults>
</compile_context>

<pallas_src>
import functools

import jax
import jax.numpy as jnp
from jax import lax
from jax.experimental import pallas as pl
from jax.experimental.pallas import tpu as pltpu


def _round_up(x: int, m: int) -> int:
    return ((x + m - 1) // m) * m


def _roll(x, s: int, axis: int):
    """Static circular shift along `axis` (single XLU rotate)."""
    n = x.shape[axis]
    s = s % n
    if s == 0:
        return x
    return pltpu.roll(x, s, axis)


def _sliding_max_lanes(x, radius: int):
    """Centered sliding-window max of width 2*radius+1 along the lane axis.

    Log-depth running max: doubling circular rolls build a backward running
    max of width w (smallest power of two >= radius+1 <= 2*radius+1); two
    placements of that window cover [i-r, i+r] exactly.  The caller provides
    >= radius lanes of -inf to the right of the real columns, so circular
    wrap-around only ever picks up -inf for the kept columns.
    """
    if radius == 0:
        return x
    axis = x.ndim - 1
    m = x
    w = 1
    while w < radius + 1:
        m = jnp.maximum(m, _roll(m, w, axis))
        w *= 2
    return jnp.maximum(_roll(m, -radius, axis), _roll(m, radius + 1 - w, axis))


def _maxpool_kernel(x_ref, o_ref, t_ref, *, radius, h_block, pad_top, H, W,
                    h_chunk):
    # x_ref: (H, W)   whole (unpadded) map of one batch element, VMEM resident
    #                 (its block index depends only on b).
    # o_ref: (h_block, W)   output row tile, final layout.
    # t_ref: (Hc, Wc) -inf canvas scratch; after the h==0 build it holds the
    #                 horizontal sliding max, with the real map's rows at
    #                 [pad_top, pad_top+H) and -inf everywhere else.
    r = radius
    Hc, Wc = t_ref.shape
    h = pl.program_id(1)

    @pl.when(h == 0)
    def _build_canvas():
        t_ref[...] = jnp.full(t_ref.shape, -jnp.inf, t_ref.dtype)
        t_ref[pl.ds(pad_top, H), pl.ds(0, W)] = x_ref[...]
        # Horizontal (lane) pass, once per image, in row strips so the live
        # VMEM temporaries stay bounded for very tall maps.
        for c0 in range(0, Hc, h_chunk):
            rows = min(h_chunk, Hc - c0)
            t_ref[pl.ds(c0, rows), :] = _sliding_max_lanes(
                t_ref[pl.ds(c0, rows), :], r)

    # Vertical pass for this row tile: direct (2r+1)-term max over shifted
    # row slices of the canvas (vld + VPU max; no sublane rolls, XLU stays
    # free for the horizontal pass).  Canvas row c holds input row c-pad_top,
    # so output row g needs canvas rows [g+pad_top-r, g+pad_top+r], all of
    # which exist (rows outside the real map are -inf).
    row0 = h * h_block + (pad_top - r)
    acc = t_ref[pl.ds(row0, h_block), :]
    for d in range(1, 2 * r + 1):
        acc = jnp.maximum(acc, t_ref[pl.ds(row0 + d, h_block), :])
    o_ref[...] = acc[:, :W]


def max_pool(x, nms_radius: int, *, h_block=None):
    """Equivalent of MaxPool(nms_radius).forward(x) for x of shape (B, H, W)."""
    B, H, W = x.shape
    r = int(nms_radius)
    if r <= 0:
        return x
    if not jnp.issubdtype(x.dtype, jnp.floating):
        raise TypeError("max_pool expects a floating dtype (-inf padding)")
    # TODO(synk): on v5e, bf16 inputs would be better served by bf16 HBM I/O
    # with an f32 compute canvas (no native bf16 VPU there); f32 is exact here.

    # Row-tile height: whole map per tile unless the map is tall.  Tiling only
    # shrinks the output double-buffer and overlaps writeback; the canvas and
    # horizontal pass are per image either way, so one tile is best on
    # single-TC v5e/v6e and for SuperPoint-sized maps.
    if h_block is None:
        h_block = H if H <= 512 else 512
    h_block = int(h_block)
    if h_block >= H:
        h_block = H
    else:
        h_block = max(8, _round_up(h_block, 8))
    num_h = -(-H // h_block)

    pad_top = _round_up(r, 8)                     # 8-aligned copy destination
    Wc = _round_up(W + r, 128)                    # one-sided -inf lane pad
    Hc = _round_up(num_h * h_block + pad_top + r, 8)
    h_chunk = min(Hc, 512)

    itemsize = x.dtype.itemsize
    in_bytes = 2 * H * W * itemsize               # double-buffered input block
    vmem_needed = itemsize * (Hc * Wc + 3 * h_chunk * Wc
                              + 2 * h_block * W + 3 * h_block * Wc) + in_bytes

    try:
        vmem_cap = int(pltpu.get_tpu_info().vmem_capacity_bytes)
    except Exception:
        vmem_cap = 64 << 20                       # most restrictive (v7x)

    in_spec_extra = {}
    if in_bytes > vmem_cap // 4:
        # Very large maps: drop to single input buffering (only the next-image
        # prefetch is lost) so whole-map residency fits v7x's 64 MiB VMEM.
        in_spec_extra["pipeline_mode"] = pl.Buffered(1)
        vmem_needed -= H * W * itemsize
    # TODO(synk): maps whose canvas alone exceeds VMEM need a manual halo DMA
    # from memory_space=pl.ANY instead of whole-map residency.

    cp_kwargs = dict(dimension_semantics=("parallel", "arbitrary"))
    if vmem_needed > (16 << 20):
        cp_kwargs["vmem_limit_bytes"] = int(
            min(vmem_needed + (8 << 20), int(0.85 * vmem_cap)))

    kernel = functools.partial(
        _maxpool_kernel, radius=r, h_block=h_block, pad_top=pad_top,
        H=H, W=W, h_chunk=h_chunk)

    cost = pl.CostEstimate(
        flops=B * H * W * (4 * r + 4),
        transcendentals=0,
        bytes_accessed=2 * B * H * W * itemsize)

    return pl.pallas_call(
        kernel,
        out_shape=jax.ShapeDtypeStruct((B, H, W), x.dtype),
        grid=(B, num_h),
        in_specs=[pl.BlockSpec((None, H, W), lambda b, h: (b, 0, 0),
                               **in_spec_extra)],
        out_specs=pl.BlockSpec((None, h_block, W), lambda b, h: (b, h, 0)),
        scratch_shapes=[pltpu.VMEM((Hc, Wc), x.dtype)],
        compiler_params=pltpu.CompilerParams(**cp_kwargs),
        cost_estimate=cost,
    )(x)


def _reference_maxpool(x, nms_radius: int):
    # Pure-JAX reference: sliding-window max with -inf padding, stride 1.
    r = nms_radius
    return lax.reduce_window(
        x, -jnp.inf, lax.max,
        window_dimensions=(1, 2 * r + 1, 2 * r + 1),
        window_strides=(1, 1, 1),
        padding=((0, 0), (r, r), (r, r)))


if __name__ == "__main__":
    key = jax.random.PRNGKey(0)

    # (shape, nms_radius, h_block override); SuperPoint's default radius is 4.
    cases = [
        ((2, 16, 16), 4, None),
        ((1, 24, 20), 2, None),
        ((2, 16, 16), 1, None),
        ((1, 40, 36), 4, 16),   # exercises the multi-row-tile (h > 0) path
    ]
    for shape, r, hb in cases:
        key, sub = jax.random.split(key)
        x = jax.random.normal(sub, shape, dtype=jnp.float32)
        out = jax.block_until_ready(max_pool(x, r, h_block=hb))
        ref = _reference_maxpool(x, r)
        assert out.shape == shape, (out.shape, shape)
        assert out.dtype == x.dtype
        assert jnp.allclose(out, ref), f"Pallas max-pool mismatch for {shape}, r={r}"

    print("KERNEL_OK")
</pallas_src>

<mosaic_0001>
module attributes {stable_mosaic.version = 11 : i64} {
  func.func @_maxpool_kernel(%arg0: i32, %arg1: i32, %arg2: memref<1x16x16xf32, #tpu.memory_space<vmem>>, %arg3: memref<1x16x16xf32, #tpu.memory_space<vmem>>, %arg4: memref<32x128xf32, #tpu.memory_space<vmem>>) attributes {dimension_semantics = [#tpu.dimension_semantics<parallel>, #tpu.dimension_semantics<arbitrary>], iteration_bounds = array<i64: 2, 1>, scalar_prefetch = 0 : i64, scratch_operands = 1 : i64, tpu.core_type = #tpu.core_type<tc>, window_params = [{transform_indices = @transform_0, window_bounds = array<i64: 1, 16, 16>}, {transform_indices = @transform_1, window_bounds = array<i64: 1, 16, 16>}]} {
    %c0_i32 = arith.constant 0 : i32
    %0 = arith.cmpi eq, %arg1, %c0_i32 : i32
    %1 = arith.extui %0 : i1 to i32
    %c0_i32_0 = arith.constant 0 : i32
    %2 = arith.cmpi ne, %1, %c0_i32_0 : i32
    scf.if %2 {
      %cst = arith.constant 0xFF800000 : f32
      %43 = vector.broadcast %cst : f32 to vector<32x128xf32>
      %c0_13 = arith.constant 0 : index
      %c0_14 = arith.constant 0 : index
      %44 = vector.load %arg4[%c0_13, %c0_14] : memref<32x128xf32, #tpu.memory_space<vmem>>, vector<32x128xf32>
      tpu.vector_store %arg4[%c0_13, %c0_14], %43 {strides = array<i32>} : memref<32x128xf32, #tpu.memory_space<vmem>>, vector<32x128xf32>,
      %c0_15 = arith.constant 0 : index
      %c0_16 = arith.constant 0 : index
      %c0_17 = arith.constant 0 : index
      %45 = vector.load %arg2[%c0_15, %c0_16, %c0_17] : memref<1x16x16xf32, #tpu.memory_space<vmem>>, vector<1x16x16xf32>
      %46 = vector.shape_cast %45 : vector<1x16x16xf32> to vector<16x16xf32>
      %c8 = arith.constant 8 : index
      %c0_18 = arith.constant 0 : index
      %47 = vector.load %arg4[%c8, %c0_18] : memref<32x128xf32, #tpu.memory_space<vmem>>, vector<16x16xf32>
      tpu.vector_store %arg4[%c8, %c0_18], %46 {strides = array<i32>} : memref<32x128xf32, #tpu.memory_space<vmem>>, vector<16x16xf32>,
      %c0_19 = arith.constant 0 : index
      %c0_20 = arith.constant 0 : index
      %48 = vector.load %arg4[%c0_19, %c0_20] : memref<32x128xf32, #tpu.memory_space<vmem>>, vector<32x128xf32>
      %c1_i32_21 = arith.constant 1 : i32
      %49 = tpu.dynamic_rotate %48 by %c1_i32_21 dim 1 : vector<32x128xf32>, i32 -> vector<32x128xf32>
      %50 = arith.maximumf %48, %49 : vector<32x128xf32>
      %c2_i32_22 = arith.constant 2 : i32
      %51 = tpu.dynamic_rotate %50 by %c2_i32_22 dim 1 : vector<32x128xf32>, i32 -> vector<32x128xf32>
      %52 = arith.maximumf %50, %51 : vector<32x128xf32>
      %c4_i32_23 = arith.constant 4 : i32
      %53 = tpu.dynamic_rotate %52 by %c4_i32_23 dim 1 : vector<32x128xf32>, i32 -> vector<32x128xf32>
      %54 = arith.maximumf %52, %53 : vector<32x128xf32>
      %c124_i32 = arith.constant 124 : i32
      %55 = tpu.dynamic_rotate %54 by %c124_i32 dim 1 : vector<32x128xf32>, i32 -> vector<32x128xf32>
      %c125_i32 = arith.constant 125 : i32
      %56 = tpu.dynamic_rotate %54 by %c125_i32 dim 1 : vector<32x128xf32>, i32 -> vector<32x128xf32>
      %57 = arith.maximumf %55, %56 : vector<32x128xf32>
      %c0_24 = arith.constant 0 : index
      %c0_25 = arith.constant 0 : index
      %58 = vector.load %arg4[%c0_24, %c0_25] : memref<32x128xf32, #tpu.memory_space<vmem>>, vector<32x128xf32>
      tpu.vector_store %arg4[%c0_24, %c0_25], %57 {strides = array<i32>} : memref<32x128xf32, #tpu.memory_space<vmem>>, vector<32x128xf32>,
    } else {
    }
    %c16_i32 = arith.constant 16 : i32
    %3 = arith.muli %arg1, %c16_i32 : i32
    %c4_i32 = arith.constant 4 : i32
    %4 = arith.addi %3, %c4_i32 : i32
    %5 = arith.index_cast %4 : i32 to index
    %c0 = arith.constant 0 : index
    %6 = vector.load %arg4[%5, %c0] : memref<32x128xf32, #tpu.memory_space<vmem>>, vector<16x128xf32>
    %c1_i32 = arith.constant 1 : i32
    %7 = arith.addi %4, %c1_i32 : i32
    %8 = arith.index_cast %7 : i32 to index
    %c0_1 = arith.constant 0 : index
    %9 = vector.load %arg4[%8, %c0_1] : memref<32x128xf32, #tpu.memory_space<vmem>>, vector<16x128xf32>
    %10 = arith.maximumf %6, %9 : vector<16x128xf32>
    %c2_i32 = arith.constant 2 : i32
    %11 = arith.addi %4, %c2_i32 : i32
    %12 = arith.index_cast %11 : i32 to index
    %c0_2 = arith.constant 0 : index
    %13 = vector.load %arg4[%12, %c0_2] : memref<32x128xf32, #tpu.memory_space<vmem>>, vector<16x128xf32>
    %14 = arith.maximumf %10, %13 : vector<16x128xf32>
    %c3_i32 = arith.constant 3 : i32
    %15 = arith.addi %4, %c3_i32 : i32
    %16 = arith.index_cast %15 : i32 to index
    %c0_3 = arith.constant 0 : index
    %17 = vector.load %arg4[%16, %c0_3] : memref<32x128xf32, #tpu.memory_space<vmem>>, vector<16x128xf32>
    %18 = arith.maximumf %14, %17 : vector<16x128xf32>
    %c4_i32_4 = arith.constant 4 : i32
    %19 = arith.addi %4, %c4_i32_4 : i32
    %20 = arith.index_cast %19 : i32 to index
    %c0_5 = arith.constant 0 : index
    %21 = vector.load %arg4[%20, %c0_5] : memref<32x128xf32, #tpu.memory_space<vmem>>, vector<16x128xf32>
    %22 = arith.maximumf %18, %21 : vector<16x128xf32>
    %c5_i32 = arith.constant 5 : i32
    %23 = arith.addi %4, %c5_i32 : i32
    %24 = arith.index_cast %23 : i32 to index
    %c0_6 = arith.constant 0 : index
    %25 = vector.load %arg4[%24, %c0_6] : memref<32x128xf32, #tpu.memory_space<vmem>>, vector<16x128xf32>
    %26 = arith.maximumf %22, %25 : vector<16x128xf32>
    %c6_i32 = arith.constant 6 : i32
    %27 = arith.addi %4, %c6_i32 : i32
    %28 = arith.index_cast %27 : i32 to index
    %c0_7 = arith.constant 0 : index
    %29 = vector.load %arg4[%28, %c0_7] : memref<32x128xf32, #tpu.memory_space<vmem>>, vector<16x128xf32>
    %30 = arith.maximumf %26, %29 : vector<16x128xf32>
    %c7_i32 = arith.constant 7 : i32
    %31 = arith.addi %4, %c7_i32 : i32
    %32 = arith.index_cast %31 : i32 to index
    %c0_8 = arith.constant 0 : index
    %33 = vector.load %arg4[%32, %c0_8] : memref<32x128xf32, #tpu.memory_space<vmem>>, vector<16x128xf32>
    %34 = arith.maximumf %30, %33 : vector<16x128xf32>
    %c8_i32 = arith.constant 8 : i32
    %35 = arith.addi %4, %c8_i32 : i32
    %36 = arith.index_cast %35 : i32 to index
    %c0_9 = arith.constant 0 : index
    %37 = vector.load %arg4[%36, %c0_9] : memref<32x128xf32, #tpu.memory_space<vmem>>, vector<16x128xf32>
    %38 = arith.maximumf %34, %37 : vector<16x128xf32>
    %39 = vector.extract_strided_slice %38 {offsets = [0, 0], sizes = [16, 16], strides = [1, 1]} : vector<16x128xf32> to vector<16x16xf32>
    %c0_10 = arith.constant 0 : index
    %c0_11 = arith.constant 0 : index
    %c0_12 = arith.constant 0 : index
    %40 = vector.load %arg3[%c0_10, %c0_11, %c0_12] : memref<1x16x16xf32, #tpu.memory_space<vmem>>, vector<1x16x16xf32>
    %41 = vector.shape_cast %40 : vector<1x16x16xf32> to vector<16x16xf32>
    %42 = vector.shape_cast %39 : vector<16x16xf32> to vector<1x16x16xf32>
    tpu.vector_store %arg3[%c0_10, %c0_11, %c0_12], %42 {strides = array<i32>} : memref<1x16x16xf32, #tpu.memory_space<vmem>>, vector<1x16x16xf32>,
    return
  }
  func.func @transform_0(%arg0: i32, %arg1: i32) -> (i32, i32, i32) {
    %c0_i32 = arith.constant 0 : i32
    %c0_i32_0 = arith.constant 0 : i32
    %c0_i32_1 = arith.constant 0 : i32
    return %arg0, %c0_i32, %c0_i32_0 : i32, i32, i32
  }
  func.func @transform_1(%arg0: i32, %arg1: i32) -> (i32, i32, i32) {
    %c0_i32 = arith.constant 0 : i32
    %c0_i32_0 = arith.constant 0 : i32
    return %arg0, %arg1, %c0_i32 : i32, i32, i32
  }
}

</mosaic_0001>

<bundles_post_ra>
// kernel: tpu_custom_call.1
= control target key start
LH: loop header
LB: loop body
LE: loop exit
PB: predicated region body
PF: predicated region fallthrough
CT: control target
= control target key end

     0   :  { %6 = vsyncpa [#allocation4], 0  ;;  %s803_s0 = inlined_call_operand.hbm [shape: f32[2,16,16], index: 0, kind: input, shape index: {}]   ;;  %s804_s1 = inlined_call_operand.hbm [shape: f32[2,16,16], index: 1, kind: output, shape index: {}]  }
   0x1   :  { %8 = vsyncpa [#allocation4 + $0x1], 0 }
   0x2   :  { %9 = vsyncpa [#allocation5], 0 }
   0x3   :  { %11 = vsyncpa [#allocation5 + $0x1], 0  ;;  %s649_s6 = smov 0   ;;  %s651_s7 = smov 0  }
   0x4   :  { %s653_s8 = smov 0   ;;  %s655_s9 = smov 0  }
   0x5   :  { %s657_s10 = smov 0   ;;  %s659_s11 = smov 0  }
   0x6 LB: > { %s410_s12 = sadd.s32 4294967295, %s625_s11   ;;  %s411_s13 = sadd.s32 4294967294, %s625_s11   ;;  %s625_s11 = sphi %s659_s11, %s17_s11   ;;  %s621_s10 = sphi %s657_s10, %s815_s10   ;;  %s617_s9 = sphi %s655_s9, %s814_s9   ;;  %s613_s8 = sphi %s653_s8, %s813_s8   ;;  %s609_s7 = sphi %s651_s7, %s812_s7   ;;  %s605_s6 = sphi %s649_s6, %s811_s6  }
   0x7   : > { %s29_s14 = sadd.s32 1, %s621_s10  ;;  %s36_s15 = sadd.s32 1, %s613_s8 }
   0x8   : > { %p31_p0 = scmp.ge.s32.totalorder %s29_s14, 2  ;;  %p43_p1 = scmp.ne.s32.totalorder %s613_s8, %s609_s7 }
   0x9   : > { %p44_p2 = scmp.eq.s32.totalorder %s625_s11, 0  ;;  %p49_p3 = scmp.ne.s32.totalorder %s609_s7, %s605_s6 }
   0xa   : > { %s817_s14 = smov (%p31_p0, %s29_s14), 0  ;;  %p50_p5 = scmp.eq.s32.totalorder %s410_s12, 0 }
   0xb   : > { %p690_p4 = por %p44_p2, %p43_p1  ;;  %s33_s17 = ssub.s32 %s621_s10, %s817_s14 }
   0xc   : > { %p75_p6 = scmp.eq.s32.totalorder %s410_s12, 1  ;;  %p34_p7 = scmp.eq.s32.totalorder %s33_s17, 0 }
   0xd   : > { %p696_p8 = por %p50_p5, %p49_p3  ;;  %p81_p10 = scmp.eq.s32.totalorder %s411_s13, 1 }
   0xe   : > { %p700_p9 = por %p75_p6, %p43_p1  ;;  %p457_p13 = scmp.lt.s32.totalorder %s625_s11, 2 }
   0xf   : > { %s705_s20 = scalar_select %p34_p7, %s613_s8, %s36_s15  }
  0x10   : > { %p707_p11 = por %p81_p10, %p49_p3  ;;  %s101_s22 = sand.u32 1, %s613_s8  }
  0x11   : > { %s414_s23 = sshll.u32 %s101_s22, 4  ;;  %s443_s24 = sshll.u32 %s621_s10, 8 }
  0x12   : > { %s111_s27 = scalar_lea.hbm %s803_s0, %s443_s24  ;;  %s105_s28 = scalar_lea.vmem [#allocation3], %s414_s23 }
  0x13   : > { %s112_s29 = sshll.u32 %s105_s28, 4  ;;  %p720_p0 = pnand %p457_p13, %p690_p4  ;;  %s113_s29 = int_to_ptr.vmem [resolvable:$true] %s112_s29 }
  0x14   : > { %p417_p1 = scmp.ge.s32.totalorder %s625_s11, 1  ;;  %s102_s2 = scalar_lea.sflag [#allocation4], %s101_s22 }
  0x15   : > { %p519_p2 = pneg %p720_p0  ;;  %s530_s3 = scalar_lea.vmem %s113_s29, 256 }
  0x16   : > { %p531_p3 = scmp.ne.s32.totalorder %s113_s29, %s530_s3  ;;  %s627_s4 = smov [#allocation3]  }
  0x17   : > { %s535_s5 = sshll.u32 %s627_s4, 4  ;;  %s536_s5 = int_to_ptr.vmem [resolvable:$false] %s535_s5 }
  0x18   : > { %p533_p5 = pnand %p531_p3, %p519_p2  ;;  %s537_s12 = scalar_lea.vmem %s536_s5, 512 }
  0x19   : > { %p538_p7 = scmp.lt.s32.totalorder %s113_s29, %s536_s5  ;;  %p539_p10 = scmp.lt.s32.totalorder %s537_s12, %s530_s3 }
  0x1a   : > { %p534_p6 = pneg %p533_p5 }
  0x1b   : > { %p540_p12 = por %p539_p10, %p538_p7 }
  0x1d   : > { %p541_p4 = pnand %p540_p12, %p534_p6 }
  0x1f   : > { %544 = shalt.err (!%p541_p4)
}
  0x20   : > { %s628_s13 = smov 128   ;;  %s629_s15 = smov 8  }
  0x21   : > { %452 = dma.hbm_to_vmem [thread:$0]  (!%p720_p0), %s111_s27, 256, %s113_s29, %s102_s2, %s628_s13, %s628_s13, %s629_s15  }
  0x22   : > { %p120_p13 = scmp.lt.s32.totalorder %s625_s11, 3 }
  0x24   : > { %p121_p2 = pnand %p417_p1, %p120_p13 }
  0x25   : > { %s733_s16 = sand.u32 (!%p121_p2), 1, %s609_s7  }
  0x26   : > { %124 = sbr.rel (%p121_p2) target bundleno = 565 (0x235), region = 24  ;;  %s418_s17 = sshll.u32 (!%p121_p2), %s733_s16, 4 }
  0x27   : > { %s127_s22 = scalar_lea.sflag (!%p121_p2), [#allocation4], %s733_s16  ;;  %s130_s23 = scalar_lea.vmem (!%p121_p2), [#allocation3], %s418_s17 }
  0x2b   : > { %596 = dma.done.wait (%p696_p8), %s127_s22, 256  }
  0x2c   : > { %598 = vsyncadd (%p696_p8), %s127_s22, 4294967040  ;;  %v630_v0 = vmov -inf   ;;  %s631_s24 = smov 1   ;;  %vm160_vm0 = vcmask 130048   ;;  %v159_v1 = vld [vmem:[%s130_s23 + $0x8] sm:$0xff]  ;;  %v158_v2 = vld [vmem:[%s130_s23] sm:$0xff] }
  0x2d   : > { %167 = vrot.lane.b32.xlu0 %v630_v0, %s631_s24  ;;  %155 = vst [vmem:[#allocation2 + $0x8] sm:$0xff] %v630_v0  ;;  %156 = vst [vmem:[#allocation2 + $0x10] sm:$0xff] %v630_v0  ;;  %s632_s18 = smov 2   ;;  %s633_s25 = smov 4  }
  0x2e   : > { %162 = vst.msk [vmem:[#allocation2 + $0x10] sm:$0xff] %vm160_vm0, %v159_v1  ;;  %161 = vst.msk [vmem:[#allocation2 + $0x8] sm:$0xff] %vm160_vm0, %v158_v2  ;;  %s634_s26 = smov 125   ;;  %s635_s27 = smov 124  }
  0x2f   : > { %s444_s28 = sshll.u32 %s617_s9, 8  ;;  %s148_s29 = scalar_lea.vmem [#allocation6], %s418_s17 }
  0x30   : > { %s299_s30 = sshll.u32 %s148_s29, 4  ;;  %s751_s4 = scalar_lea.hbm %s804_s1, %s444_s28  ;;  %s753_s30 = int_to_ptr.vmem [resolvable:$true] %s299_s30 }
  0x31   : > { %s284_s9 = scalar_lea.sflag [#allocation5], %s733_s16  ;;  %s545_s5 = scalar_lea.vmem %s753_s30, 256 }
  0x32   : > { %p546_p8 = scmp.ne.s32.totalorder %s753_s30, %s545_s5  ;;  %s636_s12 = smov [#allocation6]  }
  0x33   : > { %s549_s13 = sshll.u32 %s636_s12, 4  ;;  %s550_s13 = int_to_ptr.vmem [resolvable:$false] %s549_s13 }
  0x34   : > { %p547_p12 = pnand %p546_p8, %p700_p9  ;;  %s551_s15 = scalar_lea.vmem %s550_s13, 512 }
  0x35   : > { %v165_v3 = vld [vmem:[#allocation2 + $0x10] sm:$0xff]  ;;  %v164_v4 = vld [vmem:[#allocation2 + $0x8] sm:$0xff]  ;;  %p552_p1 = scmp.lt.s32.totalorder %s753_s30, %s550_s13  ;;  %p553_p3 = scmp.lt.s32.totalorder %s551_s15, %s545_s5 }
  0x36   : > { %171 = vrot.lane.b32.xlu1 %v165_v3, %s631_s24  ;;  %169 = vrot.lane.b32.xlu0 %v164_v4, %s631_s24  ;;  %p548_p0 = pneg %p547_p12 }
  0x37   : > { %p554_p5 = por %p553_p3, %p552_p1 }
  0x39   : > { %p555_p6 = pnand %p554_p5, %p548_p0 }
  0x3a   : > { %173 = vrot.lane.b32.xlu1 %v630_v0, %s631_s24 }
  0x9f   : > { %v168_v5 = vpop.permute.xlu0 %167 }
  0xa0   : > { %179 = vrot.lane.b32.xlu0 %v168_v5, %s632_s18 }
  0xa8   : > { %v172_v6 = vpop.permute.xlu1 %171  ;;  %v170_v7 = vpop.permute.xlu0 %169 }
  0xa9   : > { %v177_v8 = vmax.f32 %v165_v3, %v172_v6  ;;  %v176_v9 = vmax.f32 %v164_v4, %v170_v7 }
  0xab   : > { %183 = vrot.lane.b32.xlu0 %v177_v8, %s632_s18  ;;  %181 = vrot.lane.b32.xlu1 %v176_v9, %s632_s18 }
  0xac   : > { %v174_v10 = vpop.permute.xlu1 %173 }
  0xaf   : > { %185 = vrot.lane.b32.xlu1 %v174_v10, %s632_s18 }
 0x112   : > { %v180_v11 = vpop.permute.xlu0 %179 }
 0x113   : > { %v187_v12 = vmax.f32 %v168_v5, %v180_v11 }
 0x115   : > { %191 = vrot.lane.b32.xlu0 %v187_v12, %s633_s25 }
 0x11d   : > { %v182_v13 = vpop.permute.xlu1 %181  ;;  %v184_v14 = vpop.permute.xlu0 %183 }
 0x11e   : > { %v188_v15 = vmax.f32 %v176_v9, %v182_v13  ;;  %v189_v16 = vmax.f32 %v177_v8, %v184_v14 }
 0x120   : > { %193 = vrot.lane.b32.xlu1 %v188_v15, %s633_s25  ;;  %195 = vrot.lane.b32.xlu0 %v189_v16, %s633_s25 }
 0x121   : > { %v186_v17 = vpop.permute.xlu1 %185 }
 0x122   : > { %v190_v18 = vmax.f32 %v174_v10, %v186_v17 }
 0x124   : > { %197 = vrot.lane.b32.xlu1 %v190_v18, %s633_s25 }
 0x187   : > { %v192_v19 = vpop.permute.xlu0 %191 }
 0x188   : > { %v199_v20 = vmax.f32 %v187_v12, %v192_v19 }
 0x18a   : > { %211 = vrot.lane.b32.xlu1 %v199_v20, %s634_s26  ;;  %203 = vrot.lane.b32.xlu0 %v199_v20, %s635_s27 }
 0x192   : > { %v194_v21 = vpop.permute.xlu1 %193  ;;  %v196_v22 = vpop.permute.xlu0 %195 }
 0x193   : > { %v200_v23 = vmax.f32 %v188_v15, %v194_v21  ;;  %v201_v24 = vmax.f32 %v189_v16, %v196_v22 }
 0x195   : > { %205 = vrot.lane.b32.xlu1 %v200_v23, %s635_s27  ;;  %207 = vrot.lane.b32.xlu0 %v201_v24, %s635_s27 }
 0x196   : > { %v198_v25 = vpop.permute.xlu1 %197 }
 0x197   : > { %v202_v26 = vmax.f32 %v190_v18, %v198_v25 }
 0x199   : > { %215 = vrot.lane.b32.xlu1 %v201_v24, %s634_s26  ;;  %213 = vrot.lane.b32.xlu0 %v200_v23, %s634_s26 }
 0x19d   : > { %217 = vrot.lane.b32.xlu1 %v202_v26, %s634_s26  ;;  %209 = vrot.lane.b32.xlu0 %v202_v26, %s635_s27 }
 0x1fc   : > { %v212_v27 = vpop.permute.xlu1 %211  ;;  %v204_v28 = vpop.permute.xlu0 %203 }
 0x1fd   : > { %v219_v29 = vmax.f32 %v204_v28, %v212_v27 }
 0x1ff   : > { %223 = vst [vmem:[#allocation2] sm:$0xff] %v219_v29 }
 0x207   : > { %v206_v30 = vpop.permute.xlu1 %205  ;;  %v208_v31 = vpop.permute.xlu0 %207 }
 0x20b   : > { %v216_v32 = vpop.permute.xlu1 %215  ;;  %v214_v33 = vpop.permute.xlu0 %213 }
 0x20c   : > { %v221_v34 = vmax.f32 %v208_v31, %v216_v32  ;;  %v220_v35 = vmax.f32 %v206_v30, %v214_v33 }
 0x20e   : > { %225 = vst [vmem:[#allocation2 + $0x10] sm:$0xff] %v221_v34  ;;  %224 = vst [vmem:[#allocation2 + $0x8] sm:$0xff] %v220_v35 }
 0x20f   : > { %v218_v36 = vpop.permute.xlu1 %217  ;;  %v210_v37 = vpop.permute.xlu0 %209 }
 0x210   : > { %v222_v38 = vmax.f32 %v210_v37, %v218_v36 }
 0x212   : > { %226 = vst [vmem:[#allocation2 + $0x18] sm:$0xff] %v222_v38 }
 0x215   : > { %v420_v39 = vld [vmem:[#allocation2 + $0x4] sm:$0xff]  ;;  %v421_v40 = vld [vmem:[#allocation2 + $0xc] sm:$0xff] }
 0x216   : > { %v422_v41 = vld [vmem:[#allocation2 + $0x5] sm:$0xff]  ;;  %v423_v42 = vld [vmem:[#allocation2 + $0xd] sm:$0xff] }
 0x217   : > { %v236_v43 = vmax.f32 %v420_v39, %v422_v41  ;;  %v237_v44 = vmax.f32 %v421_v40, %v423_v42  ;;  %v424_v45 = vld [vmem:[#allocation2 + $0x6] sm:$0xff]  ;;  %v425_v46 = vld [vmem:[#allocation2 + $0xe] sm:$0xff] }
 0x218   : > { %v426_v49 = vld [vmem:[#allocation2 + $0x7] sm:$0xff]  ;;  %v427_v50 = vld [vmem:[#allocation2 + $0xf] sm:$0xff] }
 0x219   : > { %v242_v47 = vmax.f32 %v236_v43, %v424_v45  ;;  %v243_v48 = vmax.f32 %v237_v44, %v425_v46  ;;  %v430_v55 = vld [vmem:[#allocation2 + $0x9] sm:$0xff]  ;;  %v431_v56 = vld [vmem:[#allocation2 + $0x11] sm:$0xff] }
 0x21a   : > { %v432_v59 = vld [vmem:[#allocation2 + $0xa] sm:$0xff]  ;;  %v433_v60 = vld [vmem:[#allocation2 + $0x12] sm:$0xff] }
 0x21b   : > { %v248_v51 = vmax.f32 %v242_v47, %v426_v49  ;;  %v249_v52 = vmax.f32 %v243_v48, %v427_v50  ;;  %v434_v63 = vld [vmem:[#allocation2 + $0xb] sm:$0xff]  ;;  %v435_v0 = vld [vmem:[#allocation2 + $0x13] sm:$0xff] }
 0x21c   : > { %v437_v3 = vld [vmem:[#allocation2 + $0x14] sm:$0xff] }
 0x21d   : > { %v254_v53 = vmax.f32 %v248_v51, %v220_v35  ;;  %v255_v54 = vmax.f32 %v249_v52, %v221_v34 }
 0x21f   : > { %v260_v57 = vmax.f32 %v254_v53, %v430_v55  ;;  %v261_v58 = vmax.f32 %v255_v54, %v431_v56 }
 0x221   : > { %v266_v61 = vmax.f32 %v260_v57, %v432_v59  ;;  %v267_v62 = vmax.f32 %v261_v58, %v433_v60 }
 0x223   : > { %v272_v1 = vmax.f32 %v266_v61, %v434_v63  ;;  %v273_v2 = vmax.f32 %v267_v62, %v435_v0 }
 0x225   : > { %v278_v4 = vmax.f32 %v272_v1, %v421_v40  ;;  %v279_v5 = vmax.f32 %v273_v2, %v437_v3 }
 0x227   : > { %281 = vst.msk [vmem:[%s148_s29] sm:$0xff] %vm160_vm0, %v278_v4  ;;  %282 = vst.msk [vmem:[%s148_s29 + $0x8] sm:$0xff] %vm160_vm0, %v279_v5 }
 0x228   : > { %558 = shalt.err (!%p555_p6)
}
 0x229   : > { %s559_s17 = scalar_lea.hbm %s751_s4, 256  ;;  %s563_s24 = scalar_lea.hbm %s804_s1, 512 }
 0x22a   : > { %p560_p7 = scmp.ne.s32.totalorder %s751_s4, %s559_s17  ;;  %p564_p13 = scmp.lt.s32.totalorder %s751_s4, %s804_s1 }
 0x22b   : > { %p565_p2 = scmp.lt.s32.totalorder %s563_s24, %s559_s17 }
 0x22c   : > { %p561_p10 = pnand %p560_p7, %p700_p9 }
 0x22d   : > { %p566_p8 = por %p565_p2, %p564_p13 }
 0x22e   : > { %p562_p4 = pneg %p561_p10 }
 0x230   : > { %p567_p12 = pnand %p566_p8, %p562_p4 }
 0x232   : > { %570 = shalt.err (!%p567_p12)
}
 0x233   : > { %s637_s26 = smov 128   ;;  %s638_s27 = smov 8  }
 0x234   : > { %447 = dma.vmem_to_hbm [thread:$0]  (%p700_p9), %s753_s30, 256, %s751_s4, %s284_s9, %s637_s26, %s637_s26, %s638_s27  }
 0x235 PF: > { %s314_s28 = sand.u32 1, %s605_s6   ;;  %p810_p0 = scmp.ge.s32.totalorder %s625_s11, 2 }
 0x236   : > { %s315_s29 = scalar_lea.sflag [#allocation5], %s314_s28 }
 0x237   : > { %p454_p1 = pnand %p810_p0, %p707_p11 }
 0x239   : > { %p455_p3 = pneg %p454_p1 }
 0x23b   : > { %600 = dma.done.wait (%p455_p3), %s315_s29, 256  }
 0x23c   : > { %602 = vsyncadd (%p455_p3), %s315_s29, 4294967040  ;;  %s17_s11 = sadd.s32 1, %s625_s11   ;;  %s811_s6 = smov %s609_s7 }
 0x23d   : > { %p14_p5 = scmp.ge.s32.totalorder %s17_s11, 4   ;;  %s812_s7 = smov %s613_s8 }
 0x23e   : > { %s813_s8 = smov %s705_s20  ;;  %s814_s9 = smov %s621_s10 }
 0x23f   : > { %s815_s10 = smov %s817_s14  ;;  %16 = sbr.rel (!%p14_p5) target bundleno = 6 (0x6), region = 82 }
 0x244   :  { %320 = vsyncpa [#allocation4], 1 }
 0x245   :  { %322 = vsyncpa [#allocation4 + $0x1], 1 }
 0x246   :  { %323 = vsyncpa [#allocation5], 1 }
 0x247   :  { %325 = vsyncpa [#allocation5 + $0x1], 1 }

</bundles_post_ra>
